<compile_context>
chip_gen: v7x
topology: tpu7x:2x2x1
jax: 0.10.0
libtpu: 0.0.40
codegen_flags: <defaults>
</compile_context>

<pallas_src>
import numpy as np
import jax
import jax.numpy as jnp
from jax.experimental import pallas as pl
from jax.experimental.pallas import tpu as pltpu


_TARGET_TILE_BYTES_OVERRIDE = None  # test hook: forces tiny tiles to exercise the cdiv tail path


def _tiling_params():
    """(target output-tile bytes, vmem_limit_bytes), derived from the chip."""
    if _TARGET_TILE_BYTES_OVERRIDE is not None:
        return int(_TARGET_TILE_BYTES_OVERRIDE), 40 * 1024 * 1024
    try:
        vmem_cap = int(getattr(pltpu.get_tpu_info(), "vmem_capacity_bytes", 0))
    except Exception:
        vmem_cap = 0
    if vmem_cap >= 96 * 1024 * 1024:   # v5e / v6e: 128 MiB VMEM, slower HBM
        return 8 * 1024 * 1024, 80 * 1024 * 1024
    if vmem_cap > 0:                   # v7x: 64 MiB VMEM, ~3.2 TB/s HBM
        return 6 * 1024 * 1024, 44 * 1024 * 1024
    return 4 * 1024 * 1024, 40 * 1024 * 1024   # unknown backend: safe everywhere


def _pick_lane_block(padded_rows, lanes, itemsize, target_bytes):
    """Largest multiple of 128 keeping an output tile (padded_rows x BL) under
    ~target_bytes.  Ragged tails are handled by a cdiv grid; tiny planes fall
    back to the full extent (always a legal BlockSpec block dim)."""
    bl = (target_bytes // max(1, padded_rows * itemsize)) // 128 * 128
    bl = max(bl, 128)
    return lanes if bl >= lanes else bl


def _make_fused_kernel(n_rois, offsets, counts):
    """Normalize each ROI's (Ni, C, BL) tile in f32 and write it into its rows
    of the concatenated (N_total, C, BL) output block."""

    def kernel(mean_ref, istd_ref, *rest):
        roi_refs = rest[:n_rois]
        out_ref = rest[n_rois]
        m = mean_ref[...]   # (1, C, 1) float32
        s = istd_ref[...]   # (1, C, 1) float32
        for idx in range(n_rois):
            x = roi_refs[idx][...].astype(jnp.float32)          # (Ni, C, BL)
            y = ((x - m) * s).astype(out_ref.dtype)
            out_ref[pl.ds(offsets[idx], counts[idx]), :, :] = y

    return kernel


@jax.jit
def _fused_normalize_concat(mean_c, istd_c, *rois):
    """rois: per-ROI (Ni, C, L) slabs (same C, L).  Returns the normalized
    concatenation of shape (sum Ni, C, L) in a single Pallas pass."""
    n = len(rois)
    C = rois[0].shape[1]
    L = rois[0].shape[2]
    dtype = rois[0].dtype

    counts = [int(r.shape[0]) for r in rois]
    offsets, off = [], 0
    for cnt in counts:
        offsets.append(off)
        off += cnt
    n_total = off

    itemsize = np.dtype(dtype).itemsize
    target_tile_bytes, vmem_limit = _tiling_params()
    padded_c = -(-C // 8) * 8                     # VMEM pads the sublane dim to 8
    BL = _pick_lane_block(n_total * padded_c, L, itemsize, target_tile_bytes)
    grid = (pl.cdiv(L, BL),)
    # TODO(synk): for very large ROI counts, add a second grid axis tiling the
    # ROI dimension so BL stays large instead of shrinking with N_total.

    mean3 = mean_c.reshape(1, C, 1)
    istd3 = istd_c.reshape(1, C, 1)

    in_specs = [
        pl.BlockSpec((1, C, 1), lambda j: (0, 0, 0)),     # channel mean (f32)
        pl.BlockSpec((1, C, 1), lambda j: (0, 0, 0)),     # channel 1/std (f32)
    ] + [
        pl.BlockSpec((cnt, C, BL), lambda j: (0, 0, j)) for cnt in counts
    ]

    return pl.pallas_call(
        _make_fused_kernel(n, offsets, counts),
        out_shape=jax.ShapeDtypeStruct((n_total, C, L), dtype),
        grid_spec=pl.GridSpec(
            grid=grid,
            in_specs=in_specs,
            out_specs=pl.BlockSpec((n_total, C, BL), lambda j: (0, 0, j)),
        ),
        compiler_params=pltpu.CompilerParams(
            dimension_semantics=("parallel",),
            vmem_limit_bytes=vmem_limit,
        ),
        cost_estimate=pl.CostEstimate(
            flops=2 * n_total * C * L,
            transcendentals=0,
            bytes_accessed=2 * n_total * C * L * itemsize + 8 * C,
        ),
    )(mean3, istd3, *rois)


class MuTILsTransform:
    """JAX/Pallas re-implementation of the PyTorch MuTILsTransform module."""

    def __init__(self, image_mean=None, image_std=None, ignore_ks=None):
        self.image_mean = list(image_mean) if image_mean else [0.485, 0.456, 0.406]
        self.image_std = list(image_std) if image_std else [0.229, 0.224, 0.225]
        self.ignore_ks = list(ignore_ks) if ignore_ks else ["idx", "roiname"]
        # Precompute once in f32 (better precision for 1/std); kept f32 in-kernel.
        self._mean_f32 = jnp.asarray(self.image_mean, dtype=jnp.float32)
        self._inv_std_f32 = 1.0 / jnp.asarray(self.image_std, dtype=jnp.float32)

    def __call__(self, data):
        # data: list of per-ROI dicts.  Dict plumbing is host-side Python,
        # identical to the PyTorch module.
        data_new = {k: [] for k in data[0].keys()}
        for roi in data:
            for k, v in roi.items():
                data_new[k].append(v)
        batched = {k: v for k, v in data_new.items() if k not in self.ignore_ks}
        carryover = {k: v for k, v in data_new.items() if k in self.ignore_ks}

        out = {}
        for k, v in batched.items():
            if k in ("highres_rgb", "lowres_rgb"):
                for image in v:
                    if image.ndim != 4:
                        raise ValueError(
                            "images is expected to be a list of 4d tensors of "
                            "shape [1, C, H, W], got {}".format(image.shape)
                        )
                # Fused concat + normalize: one Pallas pass, no materialized concat.
                out[k] = self._normalize_and_concat(v)
            else:
                out[k] = jnp.concatenate(v, axis=0)
        out.update(carryover)
        return out

    def _normalize_and_concat(self, images):
        _, C, H, W = images[0].shape
        flat = [im.reshape(im.shape[0], C, H * W) for im in images]
        out = _fused_normalize_concat(self._mean_f32, self._inv_std_f32, *flat)
        return out.reshape(out.shape[0], C, H, W)

    def normalize(self, image):
        # API parity with the PyTorch module's .normalize (single 4d tensor).
        return self._normalize_and_concat([image])


def _reference_normalize(image, mean, std):
    mean = jnp.asarray(mean, dtype=image.dtype)
    std = jnp.asarray(std, dtype=image.dtype)
    return (image - mean[None, :, None, None]) / std[None, :, None, None]


if __name__ == "__main__":
    key = jax.random.PRNGKey(0)
    k1, k2, k3, k4 = jax.random.split(key, 4)

    C = 3            # RGB (image_mean/std have length 3)
    H_HI = W_HI = 16
    H_LO = W_LO = 8
    N_ROIS = 2

    keys_hi = jax.random.split(k1, N_ROIS)
    keys_lo = jax.random.split(k2, N_ROIS)
    keys_mk = jax.random.split(k3, N_ROIS)
    data = []
    for i in range(N_ROIS):
        data.append(
            {
                "highres_rgb": jax.random.uniform(
                    keys_hi[i], (1, C, H_HI, W_HI), dtype=jnp.float32
                ),
                "lowres_rgb": jax.random.uniform(
                    keys_lo[i], (1, C, H_LO, W_LO), dtype=jnp.float32
                ),
                # non-ignored, non-rgb key: concatenated but not normalized
                "highres_mask": jax.random.uniform(
                    keys_mk[i], (1, 1, H_HI, W_HI), dtype=jnp.float32
                ),
                # carryover keys
                "idx": i,
                "roiname": f"roi_{i}",
            }
        )

    transform = MuTILsTransform()
    out = transform(data)
    jax.block_until_ready(out["highres_rgb"])
    jax.block_until_ready(out["lowres_rgb"])
    jax.block_until_ready(out["highres_mask"])

    # --- correctness checks against the pure-JAX reference semantics ---
    hi_cat = jnp.concatenate([d["highres_rgb"] for d in data], axis=0)
    lo_cat = jnp.concatenate([d["lowres_rgb"] for d in data], axis=0)
    mk_cat = jnp.concatenate([d["highres_mask"] for d in data], axis=0)

    ref_hi = _reference_normalize(hi_cat, transform.image_mean, transform.image_std)
    ref_lo = _reference_normalize(lo_cat, transform.image_mean, transform.image_std)

    assert out["highres_rgb"].shape == (N_ROIS, C, H_HI, W_HI)
    assert out["lowres_rgb"].shape == (N_ROIS, C, H_LO, W_LO)
    assert out["highres_mask"].shape == (N_ROIS, 1, H_HI, W_HI)
    assert jnp.allclose(out["highres_rgb"], ref_hi, atol=1e-5, rtol=1e-5)
    assert jnp.allclose(out["lowres_rgb"], ref_lo, atol=1e-5, rtol=1e-5)
    assert jnp.allclose(out["highres_mask"], mk_cat)
    assert out["idx"] == [0, 1]
    assert out["roiname"] == [f"roi_{i}" for i in range(N_ROIS)]

    # --- exercise the multi-block / ragged-tail lane tiling path ---
    # H*W = 576 = 4*128 + 64 with a forced tiny tile budget -> grid of 5 lane
    # blocks, the last one partial (handled by the cdiv grid).
    _TARGET_TILE_BYTES_OVERRIDE = 4096
    img = jax.random.uniform(k4, (1, C, 24, 24), dtype=jnp.float32)
    got = transform.normalize(img)
    jax.block_until_ready(got)
    ref = _reference_normalize(img, transform.image_mean, transform.image_std)
    assert got.shape == img.shape
    assert jnp.allclose(got, ref, atol=1e-5, rtol=1e-5)
    _TARGET_TILE_BYTES_OVERRIDE = None

    print("KERNEL_OK")
</pallas_src>

<mosaic_0001>
module attributes {stable_mosaic.version = 11 : i64} {
  func.func @kernel(%arg0: i32, %arg1: memref<1x3x1xf32, #tpu.memory_space<vmem>>, %arg2: memref<1x3x1xf32, #tpu.memory_space<vmem>>, %arg3: memref<1x3x256xf32, #tpu.memory_space<vmem>>, %arg4: memref<1x3x256xf32, #tpu.memory_space<vmem>>, %arg5: memref<2x3x256xf32, #tpu.memory_space<vmem>>) attributes {dimension_semantics = [#tpu.dimension_semantics<parallel>], iteration_bounds = array<i64: 1>, scalar_prefetch = 0 : i64, scratch_operands = 0 : i64, tpu.core_type = #tpu.core_type<tc>, window_params = [{pipeline_mode = #tpu.pipeline_mode<synchronous>, transform_indices = @transform_0, window_bounds = array<i64: 1, 3, 1>}, {pipeline_mode = #tpu.pipeline_mode<synchronous>, transform_indices = @transform_1, window_bounds = array<i64: 1, 3, 1>}, {transform_indices = @transform_2, window_bounds = array<i64: 1, 3, 256>}, {transform_indices = @transform_3, window_bounds = array<i64: 1, 3, 256>}, {transform_indices = @transform_4, window_bounds = array<i64: 2, 3, 256>}]} {
    %c0 = arith.constant 0 : index
    %c0_0 = arith.constant 0 : index
    %c0_1 = arith.constant 0 : index
    %0 = vector.load %arg1[%c0, %c0_0, %c0_1] : memref<1x3x1xf32, #tpu.memory_space<vmem>>, vector<1x3x1xf32>
    %c0_2 = arith.constant 0 : index
    %c0_3 = arith.constant 0 : index
    %c0_4 = arith.constant 0 : index
    %1 = vector.load %arg2[%c0_2, %c0_3, %c0_4] : memref<1x3x1xf32, #tpu.memory_space<vmem>>, vector<1x3x1xf32>
    %c0_5 = arith.constant 0 : index
    %c0_6 = arith.constant 0 : index
    %c0_7 = arith.constant 0 : index
    %2 = vector.load %arg3[%c0_5, %c0_6, %c0_7] : memref<1x3x256xf32, #tpu.memory_space<vmem>>, vector<1x3x256xf32>
    %3 = vector.broadcast %0 : vector<1x3x1xf32> to vector<1x3x256xf32>
    %4 = arith.subf %2, %3 : vector<1x3x256xf32>
    %5 = vector.broadcast %1 : vector<1x3x1xf32> to vector<1x3x256xf32>
    %6 = arith.mulf %4, %5 : vector<1x3x256xf32>
    %c0_8 = arith.constant 0 : index
    %c0_9 = arith.constant 0 : index
    %c0_10 = arith.constant 0 : index
    %7 = vector.load %arg5[%c0_8, %c0_9, %c0_10] : memref<2x3x256xf32, #tpu.memory_space<vmem>>, vector<1x3x256xf32>
    tpu.vector_store %arg5[%c0_8, %c0_9, %c0_10], %6 {strides = array<i32>} : memref<2x3x256xf32, #tpu.memory_space<vmem>>, vector<1x3x256xf32>,
    %c0_11 = arith.constant 0 : index
    %c0_12 = arith.constant 0 : index
    %c0_13 = arith.constant 0 : index
    %8 = vector.load %arg4[%c0_11, %c0_12, %c0_13] : memref<1x3x256xf32, #tpu.memory_space<vmem>>, vector<1x3x256xf32>
    %9 = vector.broadcast %0 : vector<1x3x1xf32> to vector<1x3x256xf32>
    %10 = arith.subf %8, %9 : vector<1x3x256xf32>
    %11 = vector.broadcast %1 : vector<1x3x1xf32> to vector<1x3x256xf32>
    %12 = arith.mulf %10, %11 : vector<1x3x256xf32>
    %c1 = arith.constant 1 : index
    %c0_14 = arith.constant 0 : index
    %c0_15 = arith.constant 0 : index
    %13 = vector.load %arg5[%c1, %c0_14, %c0_15] : memref<2x3x256xf32, #tpu.memory_space<vmem>>, vector<1x3x256xf32>
    tpu.vector_store %arg5[%c1, %c0_14, %c0_15], %12 {strides = array<i32>} : memref<2x3x256xf32, #tpu.memory_space<vmem>>, vector<1x3x256xf32>,
    return
  }
  func.func @transform_0(%arg0: i32) -> (i32, i32, i32) {
    %c0_i32 = arith.constant 0 : i32
    %c0_i32_0 = arith.constant 0 : i32
    %c0_i32_1 = arith.constant 0 : i32
    %c0_i32_2 = arith.constant 0 : i32
    return %c0_i32, %c0_i32_0, %c0_i32_1 : i32, i32, i32
  }
  func.func @transform_1(%arg0: i32) -> (i32, i32, i32) {
    %c0_i32 = arith.constant 0 : i32
    %c0_i32_0 = arith.constant 0 : i32
    %c0_i32_1 = arith.constant 0 : i32
    %c0_i32_2 = arith.constant 0 : i32
    return %c0_i32, %c0_i32_0, %c0_i32_1 : i32, i32, i32
  }
  func.func @transform_2(%arg0: i32) -> (i32, i32, i32) {
    %c0_i32 = arith.constant 0 : i32
    %c0_i32_0 = arith.constant 0 : i32
    %c0_i32_1 = arith.constant 0 : i32
    return %c0_i32, %c0_i32_0, %arg0 : i32, i32, i32
  }
  func.func @transform_3(%arg0: i32) -> (i32, i32, i32) {
    %c0_i32 = arith.constant 0 : i32
    %c0_i32_0 = arith.constant 0 : i32
    %c0_i32_1 = arith.constant 0 : i32
    return %c0_i32, %c0_i32_0, %arg0 : i32, i32, i32
  }
  func.func @transform_4(%arg0: i32) -> (i32, i32, i32) {
    %c0_i32 = arith.constant 0 : i32
    %c0_i32_0 = arith.constant 0 : i32
    %c0_i32_1 = arith.constant 0 : i32
    return %c0_i32, %c0_i32_0, %arg0 : i32, i32, i32
  }
}

</mosaic_0001>

<bundles_post_ra>
// kernel: _fused_normalize_concat.1
= control target key start
LH: loop header
LB: loop body
LE: loop exit
PB: predicated region body
PF: predicated region fallthrough
CT: control target
= control target key end

     0   :  { %v60_v0 = vmov 0   ;;  %v61_v3 = vmov 839922192   ;;  %v27_v5 = vlaneseq  ;;  %s105_s0 = inlined_call_operand.vmem [shape: f32[1,3,1], index: 0, kind: input, shape index: {}]   ;;  %s106_s1 = inlined_call_operand.vmem [shape: f32[1,3,1], index: 1, kind: input, shape index: {}]   ;;  %s107_s2 = inlined_call_operand.vmem [shape: f32[1,3,256], index: 2, kind: input, shape index: {}]   ;;  %s108_s3 = inlined_call_operand.vmem [shape: f32[1,3,256], index: 3, kind: input, shape index: {}]   ;;  %s109_s4 = inlined_call_operand.vmem [shape: f32[2,3,256], index: 4, kind: output, shape index: {}]  }
   0x1   :  { %59 = vset.pattern.permute.xlu0 %v60_v0  ;;  %v17_v1 = vld [vmem:[%s105_s0] sm:$0x7]  ;;  %v25_v4 = vunpack.c.l.s4 %v61_v3 }
   0x2   :  { %22 = vperm.xlu0 %59, %v17_v1   ;;  %v18_v2 = vld [vmem:[%s106_s1] sm:$0x7]  ;;  %v28_v7 = vshrl.u32 %v27_v5, 7 }
   0x3   :  { %v26_v6 = vunpack.c.0.s8 %v25_v4  ;;  %v19_v11 = vld [vmem:[%s107_s2] sm:$0x77] }
   0x4   :  { %v47_v12 = vld [vmem:[%s108_s3] sm:$0x77] }
   0x5   :  { %v29_v8 = vsub.s32 %v26_v6, %v28_v7 }
   0x6   :  { %35 = vperm.xlu0 %59, %v18_v2  }
  0x81   :  { %v23_v9 = vpop.permute.xlu0 %22 }
  0x82   :  { %v30_v10 = vrot.slane %v23_v9, %v29_v8 }
  0x84   :  { %v32_v14 = vsub.f32 %v19_v11, %v30_v10  ;;  %v48_v15 = vsub.f32 %v47_v12, %v30_v10 }
  0x85   :  { %v36_v13 = vpop.permute.xlu0 %35 }
  0x86   :  { %v43_v16 = vrot.slane %v36_v13, %v29_v8 }
  0x88   :  { %v45_v17 = vmul.f32 %v43_v16, %v32_v14  ;;  %v49_v18 = vmul.f32 %v48_v15, %v43_v16 }
  0x8a   :  { %46 = vst [vmem:[%s109_s4] sm:$0x77] %v45_v17  ;;  %56 = vst [vmem:[%s109_s4 + $0x8] sm:$0x77] %v49_v18 }

</bundles_post_ra>
